<compile_context>
chip_gen: v6e
topology: v6e:2x2x1
jax: 0.10.0
libtpu: 0.0.40
codegen_flags: <defaults>
</compile_context>

<pallas_src>
import functools

import jax
import jax.numpy as jnp
from jax.experimental import pallas as pl
from jax.experimental.pallas import tpu as pltpu


def _round_up(v, m):
    return (v + m - 1) // m * m


def _linear_kernel(x_ref, wt_ref, b_ref, o_ref, acc_ref, ssq_ref, *,
                   use_norm, use_bias):
    # Grid: (i over row tiles, j over out-feature tiles, k over in-feature tiles)
    # x_ref : [tm, tk]   wt_ref: [tk, tn]   b_ref: [1, tn]
    # o_ref : [tm, tn]   acc_ref: [tm, tn] f32   ssq_ref: [tm, 1] f32
    k = pl.program_id(2)
    nk = pl.num_programs(2)

    @pl.when(k == 0)
    def _():
        acc_ref[...] = jnp.zeros_like(acc_ref)
        if use_norm:
            ssq_ref[...] = jnp.zeros_like(ssq_ref)

    x = x_ref[...]  # native dtype -> MXU-friendly (no f32 up-cast of operands)
    acc_ref[...] += jnp.dot(x, wt_ref[...], preferred_element_type=jnp.float32)

    if use_norm:
        xf = x.astype(jnp.float32)               # norm math stays f32
        ssq_ref[...] += jnp.sum(xf * xf, axis=1, keepdims=True)

    @pl.when(k == nk - 1)
    def _():
        y = acc_ref[...]
        if use_norm:
            # y / ||x||  ==  y * rsqrt(sum(x^2));  [tm,1] rsqrt on the EUP,
            # broadcast multiply on the VPU.  Zero rows give inf/nan exactly
            # like the PyTorch reference (divide by zero).
            y = y * jax.lax.rsqrt(ssq_ref[...])
        if use_bias:
            y = y + b_ref[...].astype(jnp.float32)
        o_ref[...] = y.astype(o_ref.dtype)


def make_linear(weight, bias=None, *, norm=True, use_bias=True,
                tm=256, tn=256, tk=512):
    """Build the forward fn.  weight: [C_out, C_in] (PyTorch layout), bias: [C_out].

    The weight is transposed and zero-padded ONCE here (parameter-init time),
    so repeated forward calls pay no per-call HBM transpose.
    Defaults (tm, tn, tk) = (256, 256, 512) are 256-aligned for the v6e/v7x
    MXU and small enough for v5e's / v7x's scoped VMEM; they are clamped down
    automatically for small problem sizes.
    """
    c_out, c_in = weight.shape

    # Clamp tiles to the (padded) problem; keep lane dims multiples of 128,
    # sublane dims multiples of 8.
    tn = min(tn, _round_up(c_out, 128))
    tk = min(tk, _round_up(c_in, 128))
    cout_p = _round_up(c_out, tn)
    cin_p = _round_up(c_in, tk)

    wt = jnp.pad(weight.T, ((0, cin_p - c_in), (0, cout_p - c_out)))
    if use_bias:
        assert bias is not None
        b2 = jnp.pad(bias, (0, cout_p - c_out)).reshape(1, cout_p)
    else:
        b2 = jnp.zeros((1, cout_p), weight.dtype)

    kernel = functools.partial(_linear_kernel, use_norm=norm, use_bias=use_bias)

    def forward(x):
        n, c_in_x = x.shape
        assert c_in_x == c_in
        tm_ = min(tm, _round_up(n, 8))
        n_p = _round_up(n, tm_)
        # Zero-pad rows / K: zeros contribute nothing to the matmul or to
        # sum(x^2); padded rows are sliced off below.
        x_p = jnp.pad(x, ((0, n_p - n), (0, cin_p - c_in)))

        grid = (n_p // tm_, cout_p // tn, cin_p // tk)

        cost = pl.CostEstimate(
            flops=2 * n_p * cin_p * cout_p,
            transcendentals=n_p if norm else 0,
            bytes_accessed=(x_p.size * x_p.dtype.itemsize
                            + wt.size * wt.dtype.itemsize
                            + n_p * cout_p * x.dtype.itemsize),
        )

        out = pl.pallas_call(
            kernel,
            out_shape=jax.ShapeDtypeStruct((n_p, cout_p), x.dtype),
            grid_spec=pltpu.PrefetchScalarGridSpec(
                num_scalar_prefetch=0,
                grid=grid,
                in_specs=[
                    pl.BlockSpec((tm_, tk), lambda i, j, k: (i, k)),   # x
                    pl.BlockSpec((tk, tn), lambda i, j, k: (k, j)),    # W.T
                    pl.BlockSpec((1, tn), lambda i, j, k: (0, j)),     # bias
                ],
                out_specs=pl.BlockSpec((tm_, tn), lambda i, j, k: (i, j)),
                scratch_shapes=[
                    pltpu.VMEM((tm_, tn), jnp.float32),   # matmul accumulator
                    pltpu.VMEM((tm_, 1), jnp.float32),    # per-row sum(x^2)
                ],
            ),
            compiler_params=pltpu.CompilerParams(
                dimension_semantics=("parallel", "parallel", "arbitrary")),
            cost_estimate=cost,
        )(x_p, wt, b2)

        return out[:n, :c_out]

    return forward


def _xavier_uniform(key, out_c, in_c, gain=0.01, dtype=jnp.float32):
    # nn.init.xavier_uniform_(weight, gain=0.01)
    limit = gain * jnp.sqrt(6.0 / (in_c + out_c))
    return jax.random.uniform(key, (out_c, in_c), dtype,
                              minval=-limit, maxval=limit)


if __name__ == "__main__":
    key = jax.random.PRNGKey(0)
    k_x, k_w, k_b = jax.random.split(key, 3)

    N, C_IN, C_OUT = 8, 32, 64   # small shapes consistent with x.matmul(W.T)

    x = jax.random.normal(k_x, (N, C_IN), jnp.float32)
    weight = _xavier_uniform(k_w, C_OUT, C_IN, gain=0.01)
    # nn.Linear default bias init: U(-1/sqrt(in), 1/sqrt(in))
    b_lim = 1.0 / jnp.sqrt(jnp.float32(C_IN))
    bias = jax.random.uniform(k_b, (C_OUT,), jnp.float32,
                              minval=-b_lim, maxval=b_lim)

    fwd = make_linear(weight, bias, norm=True, use_bias=True)
    out = jax.block_until_ready(fwd(x))

    # Pure-JAX reference check.
    ref = x @ weight.T
    ref = ref / jnp.linalg.norm(x, axis=1, keepdims=True)
    ref = ref + bias
    assert out.shape == (N, C_OUT)
    assert jnp.allclose(out, ref, atol=1e-5, rtol=1e-4), \
        float(jnp.max(jnp.abs(out - ref)))

    print("KERNEL_OK")
</pallas_src>

<mosaic_0001>
module attributes {stable_mosaic.version = 11 : i64} {
  func.func @_linear_kernel(%arg0: i32, %arg1: i32, %arg2: i32, %arg3: memref<8x128xf32, #tpu.memory_space<vmem>>, %arg4: memref<128x128xf32, #tpu.memory_space<vmem>>, %arg5: memref<1x128xf32, #tpu.memory_space<vmem>>, %arg6: memref<8x128xf32, #tpu.memory_space<vmem>>, %arg7: memref<8x128xf32, #tpu.memory_space<vmem>>, %arg8: memref<8x1xf32, #tpu.memory_space<vmem>>) attributes {dimension_semantics = [#tpu.dimension_semantics<parallel>, #tpu.dimension_semantics<parallel>, #tpu.dimension_semantics<arbitrary>], iteration_bounds = array<i64: 1, 1, 1>, scalar_prefetch = 0 : i64, scratch_operands = 2 : i64, tpu.core_type = #tpu.core_type<tc>, window_params = [{transform_indices = @transform_0, window_bounds = array<i64: 8, 128>}, {transform_indices = @transform_1, window_bounds = array<i64: 128, 128>}, {transform_indices = @transform_2, window_bounds = array<i64: 1, 128>}, {transform_indices = @transform_3, window_bounds = array<i64: 8, 128>}]} {
    %c0_i32 = arith.constant 0 : i32
    %0 = arith.cmpi eq, %arg2, %c0_i32 : i32
    %1 = arith.extui %0 : i1 to i32
    %c0_i32_0 = arith.constant 0 : i32
    %2 = arith.cmpi ne, %1, %c0_i32_0 : i32
    scf.if %2 {
      %cst_15 = arith.constant 0.000000e+00 : f32
      %18 = vector.broadcast %cst_15 : f32 to vector<8x128xf32>
      %c0_16 = arith.constant 0 : index
      %c0_17 = arith.constant 0 : index
      %19 = vector.load %arg7[%c0_16, %c0_17] : memref<8x128xf32, #tpu.memory_space<vmem>>, vector<8x128xf32>
      tpu.vector_store %arg7[%c0_16, %c0_17], %18 {strides = array<i32>} : memref<8x128xf32, #tpu.memory_space<vmem>>, vector<8x128xf32>,
      %cst_18 = arith.constant 0.000000e+00 : f32
      %20 = vector.broadcast %cst_18 : f32 to vector<8x1xf32>
      %c0_19 = arith.constant 0 : index
      %c0_20 = arith.constant 0 : index
      %21 = vector.load %arg8[%c0_19, %c0_20] : memref<8x1xf32, #tpu.memory_space<vmem>>, vector<8x1xf32>
      tpu.vector_store %arg8[%c0_19, %c0_20], %20 {strides = array<i32>} : memref<8x1xf32, #tpu.memory_space<vmem>>, vector<8x1xf32>,
    } else {
    }
    %c0 = arith.constant 0 : index
    %c0_1 = arith.constant 0 : index
    %3 = vector.load %arg3[%c0, %c0_1] : memref<8x128xf32, #tpu.memory_space<vmem>>, vector<8x128xf32>
    %c0_2 = arith.constant 0 : index
    %c0_3 = arith.constant 0 : index
    %4 = vector.load %arg7[%c0_2, %c0_3] : memref<8x128xf32, #tpu.memory_space<vmem>>, vector<8x128xf32>
    %c0_4 = arith.constant 0 : index
    %c0_5 = arith.constant 0 : index
    %5 = vector.load %arg4[%c0_4, %c0_5] : memref<128x128xf32, #tpu.memory_space<vmem>>, vector<128x128xf32>
    %cst = arith.constant dense<0.000000e+00> : vector<8x128xf32>
    %6 = tpu.matmul %3, %5, %cst {dimension_numbers = #tpu.dot_dimension_numbers<[1], [0], [0], [1], [0, 0, 1, 1], [], []>} : vector<8x128xf32>, vector<128x128xf32>, vector<8x128xf32> -> vector<8x128xf32>
    %7 = arith.addf %4, %6 : vector<8x128xf32>
    %c0_6 = arith.constant 0 : index
    %c0_7 = arith.constant 0 : index
    %8 = vector.load %arg7[%c0_6, %c0_7] : memref<8x128xf32, #tpu.memory_space<vmem>>, vector<8x128xf32>
    tpu.vector_store %arg7[%c0_6, %c0_7], %7 {strides = array<i32>} : memref<8x128xf32, #tpu.memory_space<vmem>>, vector<8x128xf32>,
    %c0_8 = arith.constant 0 : index
    %c0_9 = arith.constant 0 : index
    %9 = vector.load %arg8[%c0_8, %c0_9] : memref<8x1xf32, #tpu.memory_space<vmem>>, vector<8x1xf32>
    %10 = arith.mulf %3, %3 : vector<8x128xf32>
    %cst_10 = arith.constant dense<0.000000e+00> : vector<8xf32>
    %11 = vector.multi_reduction <add>, %10, %cst_10 [1] : vector<8x128xf32> to vector<8xf32>
    %12 = vector.shape_cast %11 : vector<8xf32> to vector<8x1xf32>
    %13 = arith.addf %9, %12 : vector<8x1xf32>
    %c0_11 = arith.constant 0 : index
    %c0_12 = arith.constant 0 : index
    %14 = vector.load %arg8[%c0_11, %c0_12] : memref<8x1xf32, #tpu.memory_space<vmem>>, vector<8x1xf32>
    tpu.vector_store %arg8[%c0_11, %c0_12], %13 {strides = array<i32>} : memref<8x1xf32, #tpu.memory_space<vmem>>, vector<8x1xf32>,
    %c0_i32_13 = arith.constant 0 : i32
    %15 = arith.cmpi eq, %arg2, %c0_i32_13 : i32
    %16 = arith.extui %15 : i1 to i32
    %c0_i32_14 = arith.constant 0 : i32
    %17 = arith.cmpi ne, %16, %c0_i32_14 : i32
    scf.if %17 {
      %c0_15 = arith.constant 0 : index
      %c0_16 = arith.constant 0 : index
      %18 = vector.load %arg7[%c0_15, %c0_16] : memref<8x128xf32, #tpu.memory_space<vmem>>, vector<8x128xf32>
      %c0_17 = arith.constant 0 : index
      %c0_18 = arith.constant 0 : index
      %19 = vector.load %arg8[%c0_17, %c0_18] : memref<8x1xf32, #tpu.memory_space<vmem>>, vector<8x1xf32>
      %20 = math.rsqrt %19 : vector<8x1xf32>
      %21 = vector.broadcast %20 : vector<8x1xf32> to vector<8x128xf32>
      %22 = arith.mulf %18, %21 : vector<8x128xf32>
      %c0_19 = arith.constant 0 : index
      %c0_20 = arith.constant 0 : index
      %23 = vector.load %arg5[%c0_19, %c0_20] : memref<1x128xf32, #tpu.memory_space<vmem>>, vector<1x128xf32>
      %24 = vector.broadcast %23 : vector<1x128xf32> to vector<8x128xf32>
      %25 = arith.addf %22, %24 : vector<8x128xf32>
      %c0_21 = arith.constant 0 : index
      %c0_22 = arith.constant 0 : index
      %26 = vector.load %arg6[%c0_21, %c0_22] : memref<8x128xf32, #tpu.memory_space<vmem>>, vector<8x128xf32>
      tpu.vector_store %arg6[%c0_21, %c0_22], %25 {strides = array<i32>} : memref<8x128xf32, #tpu.memory_space<vmem>>, vector<8x128xf32>,
    } else {
    }
    return
  }
  func.func @transform_0(%arg0: i32, %arg1: i32, %arg2: i32) -> (i32, i32) {
    %c0_i32 = arith.constant 0 : i32
    return %arg0, %arg2 : i32, i32
  }
  func.func @transform_1(%arg0: i32, %arg1: i32, %arg2: i32) -> (i32, i32) {
    %c0_i32 = arith.constant 0 : i32
    return %arg2, %arg1 : i32, i32
  }
  func.func @transform_2(%arg0: i32, %arg1: i32, %arg2: i32) -> (i32, i32) {
    %c0_i32 = arith.constant 0 : i32
    %c0_i32_0 = arith.constant 0 : i32
    return %c0_i32, %arg1 : i32, i32
  }
  func.func @transform_3(%arg0: i32, %arg1: i32, %arg2: i32) -> (i32, i32) {
    %c0_i32 = arith.constant 0 : i32
    return %arg0, %arg1 : i32, i32
  }
}

</mosaic_0001>

<bundles_post_ra>
// kernel: tpu_custom_call.1
= control target key start
LH: loop header
LB: loop body
LE: loop exit
PB: predicated region body
PF: predicated region fallthrough
CT: control target
= control target key end

     0   :  { %8 = vsyncpa [#allocation5], 0  ;;  %s354_s0 = inlined_call_operand.hbm [shape: f32[8,128], index: 0, kind: input, shape index: {}]   ;;  %s355_s1 = inlined_call_operand.hbm [shape: f32[128,128], index: 1, kind: input, shape index: {}]   ;;  %s356_s2 = inlined_call_operand.vmem [shape: f32[1,128], index: 2, kind: input, shape index: {}]   ;;  %s357_s3 = inlined_call_operand.hbm [shape: f32[8,128], index: 3, kind: output, shape index: {}]  }
   0x1   :  { %9 = vsyncpa [#allocation8], 0 }
   0x2   :  { %10 = vsyncpa [#allocation6], 0  ;;  %s312_s12 = smov [#allocation4]   ;;  %s313_s14 = smov [#allocation7]  }
   0x3   :  { %s17_s13 = sshll.u32 %s312_s12, 4  ;;  %s26_s15 = sshll.u32 %s313_s14, 4  ;;  %s18_s13 = int_to_ptr.vmem [resolvable:$true] %s17_s13  ;;  %s27_s15 = int_to_ptr.vmem [resolvable:$true] %s26_s15 }
   0x4   :  { %s254_s16 = scalar_lea.vmem %s18_s13, 128  ;;  %p259_p1 = scmp.lt.s32.totalorder %s18_s13, %s18_s13 }
   0x5   :  { %p255_p0 = scmp.ne.s32.totalorder %s18_s13, %s254_s16  ;;  %p260_p2 = scmp.lt.s32.totalorder %s254_s16, %s254_s16 }
   0x7   :  { %p261_p3 = por %p260_p2, %p259_p1 }
   0x9   :  { %p262_p4 = pnand %p261_p3, %p255_p0 }
   0xb   :  { %265 = shalt.err (!%p262_p4)
}
   0xc   :  { %20 = dma.hbm_to_vmem [thread:$0]  %s354_s0, 128, %s18_s13, [#allocation5]  }
   0xd   :  { %s274_s19 = scalar_lea.vmem %s27_s15, 2048  ;;  %p279_p6 = scmp.lt.s32.totalorder %s27_s15, %s27_s15 }
   0xe   :  { %p275_p5 = scmp.ne.s32.totalorder %s27_s15, %s274_s19  ;;  %p280_p7 = scmp.lt.s32.totalorder %s274_s19, %s274_s19 }
  0x10   :  { %p281_p8 = por %p280_p7, %p279_p6 }
  0x12   :  { %p282_p9 = pnand %p281_p8, %p275_p5 }
  0x14   :  { %285 = shalt.err (!%p282_p9)
}
  0x15   :  { %s314_s20 = smov 128   ;;  %s315_s21 = smov 8  }
  0x16   :  { %32 = dma.hbm_to_vmem [thread:$0]  %s355_s1, 2048, %s27_s15, [#allocation8], %s314_s20, %s314_s20, %s315_s21  }
  0x17   :  { %306 = dma.done.wait [#allocation5], 128  }
  0x18   :  { %307 = vsyncadd [#allocation5], 4294967168 }
  0x19   :  { %308 = dma.done.wait [#allocation8], 2048  }
  0x1a   :  { %309 = vsyncadd [#allocation8], 4294965248  ;;  %vm46_vm0 = vcmask 7168   ;;  %v316_v0 = vmov 0.0   ;;  %vm317_vm1 = vmmov 0   ;;  %v48_v1 = vld [vmem:[#allocation4] sm:$0xff] }
  0x1b   :  { %200 = vmatprep.subr.mxu0 %v316_v0  ;;  %232 = vmatprep.mubr.msk.f32.mxu0 %vm317_vm1, %v316_v0  ;;  %47 = vst.msk [vmem:[#allocation3] sm:$0xff] %vm46_vm0, %v316_v0  ;;  %v65_v2 = vld [vmem:[#allocation7 + $0x78] sm:$0xff]  ;;  %v64_v3 = vld [vmem:[#allocation7 + $0x70] sm:$0xff]  ;;  %v139_v4 = vmul.f32 %v48_v1, %v48_v1  ;;  %v63_v5 = vld [vmem:[#allocation7 + $0x68] sm:$0xff]  ;;  %v318_v13 = vmov 0   ;;  %s319_s24 = smov [#allocation9]  }
  0x1c   :  { %201 = vmatpush3.msra.mxu0 %v65_v2  ;;  %v62_v6 = vld [vmem:[#allocation7 + $0x60] sm:$0xff]  ;;  %v61_v7 = vld [vmem:[#allocation7 + $0x58] sm:$0xff]  ;;  %v60_v8 = vld [vmem:[#allocation7 + $0x50] sm:$0xff]  ;;  %243 = vset.pattern.permute.xlu0 %v318_v13  ;;  %s172_s25 = sshll.u32 %s319_s24, 4  ;;  %s173_s25 = int_to_ptr.vmem [resolvable:$true] %s172_s25 }
  0x1d   :  { %202 = vmatprep.subr.mxu0 %v316_v0  ;;  %140 = vadd.xlane.f32.xlu0 %v139_v4  ;;  %v59_v9 = vld [vmem:[#allocation7 + $0x48] sm:$0xff]  ;;  %v58_v10 = vld [vmem:[#allocation7 + $0x40] sm:$0xff]  ;;  %v57_v11 = vld [vmem:[#allocation7 + $0x38] sm:$0xff]  ;;  %s286_s26 = scalar_lea.vmem %s173_s25, 128  ;;  %p291_p11 = scmp.lt.s32.totalorder %s173_s25, %s173_s25 }
  0x1e   :  { %203 = vmatpush3.msra.mxu0 %v64_v3  ;;  %v56_v12 = vld [vmem:[#allocation7 + $0x30] sm:$0xff]  ;;  %v55_v14 = vld [vmem:[#allocation7 + $0x28] sm:$0xff]  ;;  %v54_v15 = vld [vmem:[#allocation7 + $0x20] sm:$0xff]  ;;  %p287_p10 = scmp.ne.s32.totalorder %s173_s25, %s286_s26  ;;  %p292_p12 = scmp.lt.s32.totalorder %s286_s26, %s286_s26 }
  0x1f   :  { %204 = vmatprep.subr.mxu0 %v316_v0  ;;  %v53_v16 = vld [vmem:[#allocation7 + $0x18] sm:$0xff]  ;;  %v52_v17 = vld [vmem:[#allocation7 + $0x10] sm:$0xff]  ;;  %v51_v18 = vld [vmem:[#allocation7 + $0x8] sm:$0xff] }
  0x20   :  { %205 = vmatpush3.msra.mxu0 %v63_v5  ;;  %v50_v19 = vld [vmem:[#allocation7] sm:$0xff]  ;;  %v182_v27 = vld [vmem:[%s356_s2] ss:$0 sm:$0xff]  ;;  %p293_p13 = por %p292_p12, %p291_p11 }
  0x21   :  { %206 = vmatprep.subr.mxu0 %v316_v0 }
  0x22   :  { %207 = vmatpush3.msra.mxu0 %v62_v6  ;;  %v138_v20 = vld [vmem:[#allocation3] sm:$0xff]  ;;  %p294_p0 = pnand %p293_p13, %p287_p10 }
  0x23   :  { %208 = vmatprep.subr.mxu0 %v316_v0 }
  0x24   :  { %209 = vmatpush3.msra.mxu0 %v61_v7 }
  0x25   :  { %210 = vmatprep.subr.mxu0 %v316_v0 }
  0x26   :  { %211 = vmatpush3.msra.mxu0 %v60_v8 }
  0x27   :  { %212 = vmatprep.subr.mxu0 %v316_v0 }
  0x28   :  { %213 = vmatpush3.msra.mxu0 %v59_v9 }
  0x29   :  { %214 = vmatprep.subr.mxu0 %v316_v0 }
  0x2a   :  { %215 = vmatpush3.msra.mxu0 %v58_v10 }
  0x2b   :  { %216 = vmatprep.subr.mxu0 %v316_v0 }
  0x2c   :  { %217 = vmatpush3.msra.mxu0 %v57_v11 }
  0x2d   :  { %218 = vmatprep.subr.mxu0 %v316_v0 }
  0x2e   :  { %219 = vmatpush3.msra.mxu0 %v56_v12 }
  0x2f   :  { %220 = vmatprep.subr.mxu0 %v316_v0 }
  0x30   :  { %221 = vmatpush3.msra.mxu0 %v55_v14 }
  0x31   :  { %222 = vmatprep.subr.mxu0 %v316_v0 }
  0x32   :  { %223 = vmatpush3.msra.mxu0 %v54_v15 }
  0x33   :  { %224 = vmatprep.subr.mxu0 %v316_v0 }
  0x34   :  { %225 = vmatpush3.msra.mxu0 %v53_v16 }
  0x35   :  { %226 = vmatprep.subr.mxu0 %v316_v0 }
  0x36   :  { %227 = vmatpush3.msra.mxu0 %v52_v17 }
  0x37   :  { %228 = vmatprep.subr.mxu0 %v316_v0 }
  0x38   :  { %229 = vmatpush3.msra.mxu0 %v51_v18 }
  0x39   :  { %230 = vmatprep.subr.mxu0 %v316_v0 }
  0x3a   :  { %231 = vmatpush3.msra.mxu0 %v50_v19 }
  0x3b   :  { %233 = vmatmul.mubr.f32.vlgmr.msra.gmra.mxu0 %v48_v1 }
  0xa6   :  { %v141_v21 = vpop.xlane.xlu0 %140 }
  0xa7   :  { %v142_v22 = vadd.f32 %v141_v21, %v138_v20 }
  0xa9   :  { %144 = vst.msk [vmem:[#allocation3] sm:$0xff] %vm46_vm0, %v142_v22 }
  0xb0   :  { %v149_v23 = vld [vmem:[#allocation3] sm:$0xff] }
  0xb1   :  { %244 = vrsqrt.f32 %v149_v23 }
  0xbe   :  { %v245_v24 = vpop.eup %244 }
  0xbf   :  { %153 = vperm.xlu0 %243, %v245_v24  }
  0xfb   :  { %v132_v25 = vpop.f32.mrf.mxu0 }
  0xfd   :  { %v234_v26 = vpop.f32.mrf.mxu0 }
 0x13a   :  { %v154_v28 = vpop.permute.xlu0 %153 }
 0x13b   :  { %v156_v29 = vmul.f32 %v154_v28, %v132_v25 }
 0x13d   :  { %v164_v30 = vadd.f32 %v182_v27, %v156_v29 }
 0x13f   :  { %165 = vst [vmem:[#allocation9] sm:$0xff] %v164_v30 }
 0x140   :  { %297 = shalt.err (!%p294_p0)
}
 0x141   :  { %175 = dma.vmem_to_hbm [thread:$0]  %s173_s25, 128, %s357_s3, [#allocation6]  }
 0x142   :  { %310 = dma.done.wait [#allocation6], 128  }
 0x143   :  { %311 = vsyncadd [#allocation6], 4294967168 }
 0x144   :  { %179 = vsyncpa [#allocation5], 1 }
 0x145   :  { %180 = vsyncpa [#allocation8], 1 }
 0x146   :  { %181 = vsyncpa [#allocation6], 1 }

</bundles_post_ra>
